<compile_context>
chip_gen: v7x
topology: tpu7x:2x2x1
jax: 0.10.0
libtpu: 0.0.40
codegen_flags: <defaults>
</compile_context>

<pallas_src>
import functools

import numpy as np
import jax
import jax.numpy as jnp
from jax import lax
from jax.experimental import pallas as pl
from jax.experimental.pallas import tpu as pltpu


def _round_up(x, m):
    return (x + m - 1) // m * m


def _choose_tb(B):
    """Batch tile: big tiles to amortize per-step overhead, but keep >= 2 grid
    steps when B allows so the 'parallel' axis can shard across v7x's 2 TCs."""
    Bp8 = _round_up(B, 8)
    if Bp8 <= 16:
        return Bp8
    tb = min(1024, Bp8)
    half = _round_up((Bp8 + 1) // 2, 8)
    return max(8, min(tb, half))


# ----------------------------- Pallas kernel ------------------------------ #
def extractor_kernel(n_hidden,
                     x_ref,      # (TB, Kp)            f32   flattened raw input
                     w1_ref,     # (Kp, Hp)            bf16  fused conv + linear_in
                     b1_ref,     # (1, Hp)             f32   fused bias
                     wh_ref,     # (n_hidden, Hp, Hp)  bf16  backbone weights
                     bh_ref,     # (n_hidden, 1, Hp)   f32   backbone biases
                     wout_ref,   # (Hp, Ep)            bf16  linear_out weight
                     bout_ref,   # (1, Ep)             f32   linear_out bias
                     o_ref):     # (TB, Ep)            bf16
    # bf16 cast in-kernel (VPU has slack; avoids a host-side pass over x).
    x = x_ref[...].astype(jnp.bfloat16)

    # fused conv1d(pad-same) + linear_in  (no activation here, matches PyTorch)
    h = jnp.dot(x, w1_ref[...], preferred_element_type=jnp.float32) + b1_ref[...]

    # backbone: n_hidden x [Linear -> ReLU]   (statically unrolled)
    for i in range(n_hidden):
        h = jnp.dot(h.astype(jnp.bfloat16), wh_ref[i],
                    preferred_element_type=jnp.float32) + bh_ref[i]
        h = jnp.maximum(h, 0.0)

    # linear_out, stored bf16 (halves HBM writeback)
    out = jnp.dot(h.astype(jnp.bfloat16), wout_ref[...],
                  preferred_element_type=jnp.float32) + bout_ref[...]
    o_ref[...] = out.astype(o_ref.dtype)


# -------------------------- host-side weight prep -------------------------- #
def prepare_weights(params, n_channels, n_features, kernel_size, stride, n_hidden):
    """One-time: fuse conv into linear_in (unpadded-K formulation), pad
    everything lane-dense, cast matmul operands to bf16, upload to device."""
    l_out = (n_features + stride - 1) // stride
    p = max(0, (l_out - 1) * stride + kernel_size - n_features)
    pad_l = p // 2

    w_conv = np.asarray(params["w_conv"], np.float32)          # (C, Kw), 1 out channel
    b_conv = float(np.asarray(params["b_conv"], np.float32).reshape(-1)[0])
    w_in   = np.asarray(params["w_in"],  np.float32)           # (l_out, H)
    b_in   = np.asarray(params["b_in"],  np.float32)           # (H,)
    w_h    = np.asarray(params["w_h"],   np.float32)           # (n_hidden, H, H)
    b_h    = np.asarray(params["b_h"],   np.float32)           # (n_hidden, H)
    w_out  = np.asarray(params["w_out"], np.float32)           # (H, E)
    b_out  = np.asarray(params["b_out"], np.float32)           # (E,)

    assert w_conv.shape == (n_channels, kernel_size), "expects single conv output channel"
    assert w_in.shape[0] == l_out, "linear_in input dim must equal conv output length"

    H, E = w_in.shape[1], w_out.shape[1]
    Hp, Ep = _round_up(H, 128), _round_up(E, 128)
    K = n_channels * n_features                 # contraction dim over the RAW input
    Kp = _round_up(K, 8)                        # sublane alignment only (96 -> 96)

    # Conv-as-matmul against the UNPADDED input: output position o reads window
    # [o*stride - pad_l, o*stride - pad_l + kernel_size); positions outside
    # [0, L) sit in the zero-pad region and are simply dropped.
    w_conv_mat = np.zeros((K, l_out), np.float32)
    for c in range(n_channels):
        for o in range(l_out):
            start = o * stride - pad_l
            for kk in range(kernel_size):
                pos = start + kk
                if 0 <= pos < n_features:
                    w_conv_mat[c * n_features + pos, o] += w_conv[c, kk]

    # fold conv into linear_in:  (x@Wc + b_conv) @ w_in + b_in
    W1 = w_conv_mat @ w_in                                     # (K, H)
    b1 = b_conv * w_in.sum(axis=0) + b_in                      # (H,)

    # zero-pad to lane-/sublane-dense shapes
    W1_p   = np.zeros((Kp, Hp), np.float32);  W1_p[:K, :H] = W1
    b1_p   = np.zeros((1, Hp),  np.float32);  b1_p[0, :H] = b1
    wh_p   = np.zeros((n_hidden, Hp, Hp), np.float32); wh_p[:, :H, :H] = w_h
    bh_p   = np.zeros((n_hidden, 1, Hp),  np.float32); bh_p[:, 0, :H] = b_h
    wout_p = np.zeros((Hp, Ep), np.float32); wout_p[:H, :E] = w_out
    bout_p = np.zeros((1, Ep),  np.float32); bout_p[0, :E] = b_out

    return {
        "K": K, "Kp": Kp, "Hp": Hp, "Ep": Ep, "H": H, "E": E,
        "weights": (
            jnp.asarray(W1_p,   jnp.bfloat16),
            jnp.asarray(b1_p,   jnp.float32),
            jnp.asarray(wh_p,   jnp.bfloat16),
            jnp.asarray(bh_p,   jnp.float32),
            jnp.asarray(wout_p, jnp.bfloat16),
            jnp.asarray(bout_p, jnp.float32),
        ),
    }


# ------------------------------ host wrapper ------------------------------ #
def make_extractor_mlp(params, *, n_channels, n_features, kernel_size, stride,
                       n_hidden):
    """Build once (weight fusion + upload), returns a jitted forward(x)."""
    prep = prepare_weights(params, n_channels, n_features, kernel_size, stride,
                           n_hidden)
    K, Kp, Hp, Ep, E = prep["K"], prep["Kp"], prep["Hp"], prep["Ep"], prep["E"]
    weights = prep["weights"]

    @jax.jit
    def _forward(x, W1, b1, w_h, b_h, w_out, b_out):
        B = x.shape[0]
        x2d = x.reshape(B, K)                 # free view: (B, C, L) -> (B, C*L)
        TB = _choose_tb(B)
        Bp = _round_up(B, TB)
        if Bp != B or Kp != K:
            # explicit zero-fill of pad rows/cols (never feed garbage to MXU)
            x2d = jnp.pad(x2d, ((0, Bp - B), (0, Kp - K)))

        kernel = functools.partial(extractor_kernel, n_hidden)
        out = pl.pallas_call(
            kernel,
            out_shape=jax.ShapeDtypeStruct((Bp, Ep), jnp.bfloat16),
            grid_spec=pltpu.PrefetchScalarGridSpec(
                num_scalar_prefetch=0,
                grid=(Bp // TB,),
                in_specs=[
                    pl.BlockSpec((TB, Kp), lambda i: (i, 0)),               # x tile
                    pl.BlockSpec((Kp, Hp), lambda i: (0, 0)),               # W1 (resident)
                    pl.BlockSpec((1, Hp), lambda i: (0, 0)),                # b1
                    pl.BlockSpec((n_hidden, Hp, Hp), lambda i: (0, 0, 0)),  # w_h
                    pl.BlockSpec((n_hidden, 1, Hp), lambda i: (0, 0, 0)),   # b_h
                    pl.BlockSpec((Hp, Ep), lambda i: (0, 0)),               # w_out
                    pl.BlockSpec((1, Ep), lambda i: (0, 0)),                # b_out
                ],
                out_specs=pl.BlockSpec((TB, Ep), lambda i: (i, 0)),
            ),
            compiler_params=pltpu.CompilerParams(
                dimension_semantics=("parallel",)),
        )(x2d, W1, b1, w_h, b_h, w_out, b_out)

        return out[:B, :E].astype(jnp.float32)

    def forward(x):
        return _forward(x, *weights)

    return forward


# ------------------------- pure-JAX reference (check) ---------------------- #
def reference_forward(x, params, *, stride, kernel_size, n_hidden):
    B, C, L = x.shape
    l_out = (L + stride - 1) // stride
    p = max(0, (l_out - 1) * stride + kernel_size - L)
    pad_l, pad_r = p // 2, p - p // 2
    w = params["w_conv"][None]                               # (1, C, K) = OIH
    y = lax.conv_general_dilated(x, w, window_strides=(stride,),
                                 padding=[(pad_l, pad_r)],
                                 dimension_numbers=("NCH", "OIH", "NCH"))
    y = y[:, 0, :] + params["b_conv"]                        # squeeze channel
    h = y @ params["w_in"] + params["b_in"]
    for i in range(n_hidden):
        h = jnp.maximum(h @ params["w_h"][i] + params["b_h"][i], 0.0)
    return h @ params["w_out"] + params["b_out"]


# ---------------------------------- main ----------------------------------- #
if __name__ == "__main__":
    # Module hyper-parameters (ExtractorMLP defaults, small n_features).
    B = 8
    n_channels = 3
    n_features = 32
    kernel_size = 16
    stride = 2
    hidden_size = 64
    embedding_size = 64
    n_hidden = 5
    l_out = (n_features + stride - 1) // stride              # 16

    key = jax.random.PRNGKey(0)
    ks = jax.random.split(key, 9)
    scale = 0.1
    params = {
        "w_conv": scale * jax.random.normal(ks[0], (n_channels, kernel_size), jnp.float32),
        "b_conv": scale * jax.random.normal(ks[1], (1,), jnp.float32),
        "w_in":   scale * jax.random.normal(ks[2], (l_out, hidden_size), jnp.float32),
        "b_in":   scale * jax.random.normal(ks[3], (hidden_size,), jnp.float32),
        "w_h":    scale * jax.random.normal(ks[4], (n_hidden, hidden_size, hidden_size), jnp.float32),
        "b_h":    scale * jax.random.normal(ks[5], (n_hidden, hidden_size), jnp.float32),
        "w_out":  scale * jax.random.normal(ks[6], (hidden_size, embedding_size), jnp.float32),
        "b_out":  scale * jax.random.normal(ks[7], (embedding_size,), jnp.float32),
    }

    x = jax.random.normal(ks[8], (B, n_channels, n_features), jnp.float32)

    # Build once (weight fusion + upload), then call the cached jitted forward.
    forward = make_extractor_mlp(params, n_channels=n_channels,
                                 n_features=n_features, kernel_size=kernel_size,
                                 stride=stride, n_hidden=n_hidden)
    out = jax.block_until_ready(forward(x))

    ref = reference_forward(x, params, stride=stride,
                            kernel_size=kernel_size, n_hidden=n_hidden)
    assert out.shape == (B, embedding_size)
    # bf16 MXU operands + bf16 output (f32 accumulation) -> relaxed tolerance
    assert jnp.allclose(out, ref, atol=3e-2, rtol=3e-2), "mismatch vs reference"

    print("KERNEL_OK")
</pallas_src>

<mosaic_0001>
module attributes {stable_mosaic.version = 11 : i64} {
  func.func @extractor_kernel(%arg0: i32, %arg1: memref<8x96xf32, #tpu.memory_space<vmem>>, %arg2: memref<96x128xbf16, #tpu.memory_space<vmem>>, %arg3: memref<1x128xf32, #tpu.memory_space<vmem>>, %arg4: memref<5x128x128xbf16, #tpu.memory_space<vmem>>, %arg5: memref<5x1x128xf32, #tpu.memory_space<vmem>>, %arg6: memref<128x128xbf16, #tpu.memory_space<vmem>>, %arg7: memref<1x128xf32, #tpu.memory_space<vmem>>, %arg8: memref<8x128xbf16, #tpu.memory_space<vmem>>) attributes {dimension_semantics = [#tpu.dimension_semantics<parallel>], iteration_bounds = array<i64: 1>, scalar_prefetch = 0 : i64, scratch_operands = 0 : i64, tpu.core_type = #tpu.core_type<tc>, window_params = [{transform_indices = @transform_0, window_bounds = array<i64: 8, 96>}, {pipeline_mode = #tpu.pipeline_mode<synchronous>, transform_indices = @transform_1, window_bounds = array<i64: 96, 128>}, {pipeline_mode = #tpu.pipeline_mode<synchronous>, transform_indices = @transform_2, window_bounds = array<i64: 1, 128>}, {pipeline_mode = #tpu.pipeline_mode<synchronous>, transform_indices = @transform_3, window_bounds = array<i64: 5, 128, 128>}, {pipeline_mode = #tpu.pipeline_mode<synchronous>, transform_indices = @transform_4, window_bounds = array<i64: 5, 1, 128>}, {pipeline_mode = #tpu.pipeline_mode<synchronous>, transform_indices = @transform_5, window_bounds = array<i64: 128, 128>}, {pipeline_mode = #tpu.pipeline_mode<synchronous>, transform_indices = @transform_6, window_bounds = array<i64: 1, 128>}, {transform_indices = @transform_7, window_bounds = array<i64: 8, 128>}]} {
    %c0 = arith.constant 0 : index
    %c0_0 = arith.constant 0 : index
    %0 = vector.load %arg1[%c0, %c0_0] : memref<8x96xf32, #tpu.memory_space<vmem>>, vector<8x96xf32>
    %1 = arith.truncf %0 : vector<8x96xf32> to vector<8x96xbf16>
    %c0_1 = arith.constant 0 : index
    %c0_2 = arith.constant 0 : index
    %2 = vector.load %arg2[%c0_1, %c0_2] : memref<96x128xbf16, #tpu.memory_space<vmem>>, vector<96x128xbf16>
    %cst = arith.constant dense<0.000000e+00> : vector<8x128xf32>
    %3 = tpu.matmul %1, %2, %cst {dimension_numbers = #tpu.dot_dimension_numbers<[1], [0], [0], [1], [0, 0, 1, 1], [], []>} : vector<8x96xbf16>, vector<96x128xbf16>, vector<8x128xf32> -> vector<8x128xf32>
    %c0_3 = arith.constant 0 : index
    %c0_4 = arith.constant 0 : index
    %4 = vector.load %arg3[%c0_3, %c0_4] : memref<1x128xf32, #tpu.memory_space<vmem>>, vector<1x128xf32>
    %5 = vector.broadcast %4 : vector<1x128xf32> to vector<8x128xf32>
    %6 = arith.addf %3, %5 : vector<8x128xf32>
    %7 = arith.truncf %6 : vector<8x128xf32> to vector<8x128xbf16>
    %c0_5 = arith.constant 0 : index
    %c0_6 = arith.constant 0 : index
    %c0_7 = arith.constant 0 : index
    %8 = vector.load %arg4[%c0_5, %c0_6, %c0_7] : memref<5x128x128xbf16, #tpu.memory_space<vmem>>, vector<1x128x128xbf16>
    %9 = vector.shape_cast %8 : vector<1x128x128xbf16> to vector<128x128xbf16>
    %cst_8 = arith.constant dense<0.000000e+00> : vector<8x128xf32>
    %10 = tpu.matmul %7, %9, %cst_8 {dimension_numbers = #tpu.dot_dimension_numbers<[1], [0], [0], [1], [0, 0, 1, 1], [], []>} : vector<8x128xbf16>, vector<128x128xbf16>, vector<8x128xf32> -> vector<8x128xf32>
    %c0_9 = arith.constant 0 : index
    %c0_10 = arith.constant 0 : index
    %c0_11 = arith.constant 0 : index
    %11 = vector.load %arg5[%c0_9, %c0_10, %c0_11] : memref<5x1x128xf32, #tpu.memory_space<vmem>>, vector<1x1x128xf32>
    %12 = vector.shape_cast %11 : vector<1x1x128xf32> to vector<1x128xf32>
    %13 = vector.broadcast %12 : vector<1x128xf32> to vector<8x128xf32>
    %14 = arith.addf %10, %13 : vector<8x128xf32>
    %cst_12 = arith.constant 0.000000e+00 : f32
    %15 = vector.broadcast %cst_12 : f32 to vector<8x128xf32>
    %16 = arith.maximumf %14, %15 : vector<8x128xf32>
    %17 = arith.truncf %16 : vector<8x128xf32> to vector<8x128xbf16>
    %c1 = arith.constant 1 : index
    %c0_13 = arith.constant 0 : index
    %c0_14 = arith.constant 0 : index
    %18 = vector.load %arg4[%c1, %c0_13, %c0_14] : memref<5x128x128xbf16, #tpu.memory_space<vmem>>, vector<1x128x128xbf16>
    %19 = vector.shape_cast %18 : vector<1x128x128xbf16> to vector<128x128xbf16>
    %cst_15 = arith.constant dense<0.000000e+00> : vector<8x128xf32>
    %20 = tpu.matmul %17, %19, %cst_15 {dimension_numbers = #tpu.dot_dimension_numbers<[1], [0], [0], [1], [0, 0, 1, 1], [], []>} : vector<8x128xbf16>, vector<128x128xbf16>, vector<8x128xf32> -> vector<8x128xf32>
    %c1_16 = arith.constant 1 : index
    %c0_17 = arith.constant 0 : index
    %c0_18 = arith.constant 0 : index
    %21 = vector.load %arg5[%c1_16, %c0_17, %c0_18] : memref<5x1x128xf32, #tpu.memory_space<vmem>>, vector<1x1x128xf32>
    %22 = vector.shape_cast %21 : vector<1x1x128xf32> to vector<1x128xf32>
    %23 = vector.broadcast %22 : vector<1x128xf32> to vector<8x128xf32>
    %24 = arith.addf %20, %23 : vector<8x128xf32>
    %cst_19 = arith.constant 0.000000e+00 : f32
    %25 = vector.broadcast %cst_19 : f32 to vector<8x128xf32>
    %26 = arith.maximumf %24, %25 : vector<8x128xf32>
    %27 = arith.truncf %26 : vector<8x128xf32> to vector<8x128xbf16>
    %c2 = arith.constant 2 : index
    %c0_20 = arith.constant 0 : index
    %c0_21 = arith.constant 0 : index
    %28 = vector.load %arg4[%c2, %c0_20, %c0_21] : memref<5x128x128xbf16, #tpu.memory_space<vmem>>, vector<1x128x128xbf16>
    %29 = vector.shape_cast %28 : vector<1x128x128xbf16> to vector<128x128xbf16>
    %cst_22 = arith.constant dense<0.000000e+00> : vector<8x128xf32>
    %30 = tpu.matmul %27, %29, %cst_22 {dimension_numbers = #tpu.dot_dimension_numbers<[1], [0], [0], [1], [0, 0, 1, 1], [], []>} : vector<8x128xbf16>, vector<128x128xbf16>, vector<8x128xf32> -> vector<8x128xf32>
    %c2_23 = arith.constant 2 : index
    %c0_24 = arith.constant 0 : index
    %c0_25 = arith.constant 0 : index
    %31 = vector.load %arg5[%c2_23, %c0_24, %c0_25] : memref<5x1x128xf32, #tpu.memory_space<vmem>>, vector<1x1x128xf32>
    %32 = vector.shape_cast %31 : vector<1x1x128xf32> to vector<1x128xf32>
    %33 = vector.broadcast %32 : vector<1x128xf32> to vector<8x128xf32>
    %34 = arith.addf %30, %33 : vector<8x128xf32>
    %cst_26 = arith.constant 0.000000e+00 : f32
    %35 = vector.broadcast %cst_26 : f32 to vector<8x128xf32>
    %36 = arith.maximumf %34, %35 : vector<8x128xf32>
    %37 = arith.truncf %36 : vector<8x128xf32> to vector<8x128xbf16>
    %c3 = arith.constant 3 : index
    %c0_27 = arith.constant 0 : index
    %c0_28 = arith.constant 0 : index
    %38 = vector.load %arg4[%c3, %c0_27, %c0_28] : memref<5x128x128xbf16, #tpu.memory_space<vmem>>, vector<1x128x128xbf16>
    %39 = vector.shape_cast %38 : vector<1x128x128xbf16> to vector<128x128xbf16>
    %cst_29 = arith.constant dense<0.000000e+00> : vector<8x128xf32>
    %40 = tpu.matmul %37, %39, %cst_29 {dimension_numbers = #tpu.dot_dimension_numbers<[1], [0], [0], [1], [0, 0, 1, 1], [], []>} : vector<8x128xbf16>, vector<128x128xbf16>, vector<8x128xf32> -> vector<8x128xf32>
    %c3_30 = arith.constant 3 : index
    %c0_31 = arith.constant 0 : index
    %c0_32 = arith.constant 0 : index
    %41 = vector.load %arg5[%c3_30, %c0_31, %c0_32] : memref<5x1x128xf32, #tpu.memory_space<vmem>>, vector<1x1x128xf32>
    %42 = vector.shape_cast %41 : vector<1x1x128xf32> to vector<1x128xf32>
    %43 = vector.broadcast %42 : vector<1x128xf32> to vector<8x128xf32>
    %44 = arith.addf %40, %43 : vector<8x128xf32>
    %cst_33 = arith.constant 0.000000e+00 : f32
    %45 = vector.broadcast %cst_33 : f32 to vector<8x128xf32>
    %46 = arith.maximumf %44, %45 : vector<8x128xf32>
    %47 = arith.truncf %46 : vector<8x128xf32> to vector<8x128xbf16>
    %c4 = arith.constant 4 : index
    %c0_34 = arith.constant 0 : index
    %c0_35 = arith.constant 0 : index
    %48 = vector.load %arg4[%c4, %c0_34, %c0_35] : memref<5x128x128xbf16, #tpu.memory_space<vmem>>, vector<1x128x128xbf16>
    %49 = vector.shape_cast %48 : vector<1x128x128xbf16> to vector<128x128xbf16>
    %cst_36 = arith.constant dense<0.000000e+00> : vector<8x128xf32>
    %50 = tpu.matmul %47, %49, %cst_36 {dimension_numbers = #tpu.dot_dimension_numbers<[1], [0], [0], [1], [0, 0, 1, 1], [], []>} : vector<8x128xbf16>, vector<128x128xbf16>, vector<8x128xf32> -> vector<8x128xf32>
    %c4_37 = arith.constant 4 : index
    %c0_38 = arith.constant 0 : index
    %c0_39 = arith.constant 0 : index
    %51 = vector.load %arg5[%c4_37, %c0_38, %c0_39] : memref<5x1x128xf32, #tpu.memory_space<vmem>>, vector<1x1x128xf32>
    %52 = vector.shape_cast %51 : vector<1x1x128xf32> to vector<1x128xf32>
    %53 = vector.broadcast %52 : vector<1x128xf32> to vector<8x128xf32>
    %54 = arith.addf %50, %53 : vector<8x128xf32>
    %cst_40 = arith.constant 0.000000e+00 : f32
    %55 = vector.broadcast %cst_40 : f32 to vector<8x128xf32>
    %56 = arith.maximumf %54, %55 : vector<8x128xf32>
    %57 = arith.truncf %56 : vector<8x128xf32> to vector<8x128xbf16>
    %c0_41 = arith.constant 0 : index
    %c0_42 = arith.constant 0 : index
    %58 = vector.load %arg6[%c0_41, %c0_42] : memref<128x128xbf16, #tpu.memory_space<vmem>>, vector<128x128xbf16>
    %cst_43 = arith.constant dense<0.000000e+00> : vector<8x128xf32>
    %59 = tpu.matmul %57, %58, %cst_43 {dimension_numbers = #tpu.dot_dimension_numbers<[1], [0], [0], [1], [0, 0, 1, 1], [], []>} : vector<8x128xbf16>, vector<128x128xbf16>, vector<8x128xf32> -> vector<8x128xf32>
    %c0_44 = arith.constant 0 : index
    %c0_45 = arith.constant 0 : index
    %60 = vector.load %arg7[%c0_44, %c0_45] : memref<1x128xf32, #tpu.memory_space<vmem>>, vector<1x128xf32>
    %61 = vector.broadcast %60 : vector<1x128xf32> to vector<8x128xf32>
    %62 = arith.addf %59, %61 : vector<8x128xf32>
    %63 = arith.truncf %62 : vector<8x128xf32> to vector<8x128xbf16>
    %c0_46 = arith.constant 0 : index
    %c0_47 = arith.constant 0 : index
    %64 = vector.load %arg8[%c0_46, %c0_47] : memref<8x128xbf16, #tpu.memory_space<vmem>>, vector<8x128xbf16>
    tpu.vector_store %arg8[%c0_46, %c0_47], %63 {strides = array<i32>} : memref<8x128xbf16, #tpu.memory_space<vmem>>, vector<8x128xbf16>,
    return
  }
  func.func @transform_0(%arg0: i32) -> (i32, i32) {
    %c0_i32 = arith.constant 0 : i32
    %c0_i32_0 = arith.constant 0 : i32
    return %arg0, %c0_i32 : i32, i32
  }
  func.func @transform_1(%arg0: i32) -> (i32, i32) {
    %c0_i32 = arith.constant 0 : i32
    %c0_i32_0 = arith.constant 0 : i32
    %c0_i32_1 = arith.constant 0 : i32
    return %c0_i32, %c0_i32_0 : i32, i32
  }
  func.func @transform_2(%arg0: i32) -> (i32, i32) {
    %c0_i32 = arith.constant 0 : i32
    %c0_i32_0 = arith.constant 0 : i32
    %c0_i32_1 = arith.constant 0 : i32
    return %c0_i32, %c0_i32_0 : i32, i32
  }
  func.func @transform_3(%arg0: i32) -> (i32, i32, i32) {
    %c0_i32 = arith.constant 0 : i32
    %c0_i32_0 = arith.constant 0 : i32
    %c0_i32_1 = arith.constant 0 : i32
    %c0_i32_2 = arith.constant 0 : i32
    return %c0_i32, %c0_i32_0, %c0_i32_1 : i32, i32, i32
  }
  func.func @transform_4(%arg0: i32) -> (i32, i32, i32) {
    %c0_i32 = arith.constant 0 : i32
    %c0_i32_0 = arith.constant 0 : i32
    %c0_i32_1 = arith.constant 0 : i32
    %c0_i32_2 = arith.constant 0 : i32
    return %c0_i32, %c0_i32_0, %c0_i32_1 : i32, i32, i32
  }
  func.func @transform_5(%arg0: i32) -> (i32, i32) {
    %c0_i32 = arith.constant 0 : i32
    %c0_i32_0 = arith.constant 0 : i32
    %c0_i32_1 = arith.constant 0 : i32
    return %c0_i32, %c0_i32_0 : i32, i32
  }
  func.func @transform_6(%arg0: i32) -> (i32, i32) {
    %c0_i32 = arith.constant 0 : i32
    %c0_i32_0 = arith.constant 0 : i32
    %c0_i32_1 = arith.constant 0 : i32
    return %c0_i32, %c0_i32_0 : i32, i32
  }
  func.func @transform_7(%arg0: i32) -> (i32, i32) {
    %c0_i32 = arith.constant 0 : i32
    %c0_i32_0 = arith.constant 0 : i32
    return %arg0, %c0_i32 : i32, i32
  }
}

</mosaic_0001>

<bundles_post_ra>
// kernel: _forward.1
= control target key start
LH: loop header
LB: loop body
LE: loop exit
PB: predicated region body
PF: predicated region fallthrough
CT: control target
= control target key end

     0   :  { %12 = vsyncpa [#allocation3], 0  ;;  %s1413_s0 = inlined_call_operand.vmem [shape: f32[8,96], index: 0, kind: input, shape index: {}]   ;;  %s1414_s1 = inlined_call_operand.vmem [shape: bf16[96,128], index: 1, kind: input, shape index: {}]   ;;  %s1415_s2 = inlined_call_operand.vmem [shape: f32[1,128], index: 2, kind: input, shape index: {}]   ;;  %s1416_s3 = inlined_call_operand.hbm [shape: bf16[5,128,128], index: 3, kind: input, shape index: {}]   ;;  %s1417_s4 = inlined_call_operand.hbm [shape: f32[5,1,128], index: 4, kind: input, shape index: {}]   ;;  %s1418_s5 = inlined_call_operand.vmem [shape: bf16[128,128], index: 5, kind: input, shape index: {}]   ;;  %s1419_s6 = inlined_call_operand.vmem [shape: f32[1,128], index: 6, kind: input, shape index: {}]   ;;  %s1420_s7 = inlined_call_operand.vmem [shape: bf16[8,128], index: 7, kind: output, shape index: {}]  }
   0x1   :  { %13 = vsyncpa [#allocation5], 0  ;;  %s1218_s24 = smov [#allocation2]   ;;  %s1170_s28 = scalar_lea.hbm %s1416_s3, 5120 }
   0x2   :  { %s25_s25 = sshll.u32 %s1218_s24, 4  ;;  %p1171_p0 = scmp.ne.s32.totalorder %s1416_s3, %s1170_s28  ;;  %s26_s25 = int_to_ptr.vmem [resolvable:$true] %s25_s25 }
   0x3   :  { %p1174_p1 = scmp.lt.u32.totalorder %s1170_s28, %s1416_s3 }
   0x5   :  { %p1176_p2 = pnand %p1174_p1, %p1171_p0 }
   0x7   :  { %1179 = shalt.err (!%p1176_p2)
}
   0x8   :  { %s1180_s10 = scalar_lea.vmem %s26_s25, 5120  ;;  %p1185_p4 = scmp.lt.s32.totalorder %s26_s25, %s26_s25 }
   0x9   :  { %p1181_p3 = scmp.ne.s32.totalorder %s26_s25, %s1180_s10  ;;  %p1186_p5 = scmp.lt.s32.totalorder %s1180_s10, %s1180_s10 }
   0xb   :  { %p1187_p6 = por %p1186_p5, %p1185_p4 }
   0xd   :  { %p1188_p7 = pnand %p1187_p6, %p1181_p3 }
   0xf   :  { %1191 = shalt.err (!%p1188_p7)
}
  0x10   :  { %s1219_s11 = smov 64   ;;  %s1220_s12 = smov 4  }
  0x11   :  { %31 = dma.hbm_to_vmem [thread:$0]  %s1416_s3, 5120, %s26_s25, [#allocation3], %s1219_s11, %s1219_s11, %s1220_s12  }
  0x12   :  { %s1221_s15 = smov [#allocation4]   ;;  %s1192_s19 = scalar_lea.hbm %s1417_s4, 80 }
  0x13   :  { %s37_s16 = sshll.u32 %s1221_s15, 4  ;;  %p1193_p8 = scmp.ne.s32.totalorder %s1417_s4, %s1192_s19  ;;  %s38_s16 = int_to_ptr.vmem [resolvable:$true] %s37_s16 }
  0x14   :  { %p1196_p9 = scmp.lt.u32.totalorder %s1192_s19, %s1417_s4 }
  0x16   :  { %p1198_p10 = pnand %p1196_p9, %p1193_p8 }
  0x18   :  { %1201 = shalt.err (!%p1198_p10)
}
  0x19   :  { %s1202_s24 = scalar_lea.vmem %s38_s16, 80  ;;  %s1206_s3 = scalar_lea.vmem %s38_s16, 96 }
  0x1a   :  { %p1203_p11 = scmp.ne.s32.totalorder %s38_s16, %s1202_s24  ;;  %p1207_p12 = scmp.lt.s32.totalorder %s38_s16, %s38_s16 }
  0x1b   :  { %p1208_p13 = scmp.lt.s32.totalorder %s1206_s3, %s1202_s24 }
  0x1d   :  { %p1209_p0 = por %p1208_p13, %p1207_p12 }
  0x1f   :  { %p1210_p1 = pnand %p1209_p0, %p1203_p11 }
  0x21   :  { %1213 = shalt.err (!%p1210_p1)
}
  0x22   :  { %s1222_s25 = smov 16   ;;  %s1223_s26 = smov 1  }
  0x23   :  { %43 = dma.hbm_to_vmem [thread:$0]  %s1417_s4, 80, %s38_s16, [#allocation5], %s1222_s25, %s1222_s25, %s1223_s26  }
  0x24   :  { %1214 = dma.done.wait [#allocation3], 5120  }
  0x25   :  { %1215 = vsyncadd [#allocation3], 4294962176 }
  0x26   :  { %1216 = dma.done.wait [#allocation5], 80  }
  0x27   :  { %1217 = vsyncadd [#allocation5], 4294967216  ;;  %v1224_v0 = vmov 0.0   ;;  %vm1225_vm0 = vmmov 0   ;;  %v1116_v1 = vld [vmem:[%s1414_s1] sm:$0xff]   ;;  %v1117_v2 = vld [vmem:[%s1414_s1 + $0x8] sm:$0xff]  }
  0x28   :  { %972 = vmatprep.subr.bf16.mxu0 %v1224_v0  ;;  %984 = vmatprep.mubr.msk.bf16.mxu0 %vm1225_vm0, %v1224_v0  ;;  %v1118_v3 = vld [vmem:[%s1414_s1 + $0x10] sm:$0xff]   ;;  %v1122_v4 = vld [vmem:[#allocation2] sm:$0xff]   ;;  %v1123_v5 = vld [vmem:[#allocation2 + $0x8] sm:$0xff]   ;;  %vm112_vm1 = vcmask 785408  }
  0x29   :  { %988 = vmatprep.subr.bf16.mxu1 %v1224_v0  ;;  %1004 = vmatprep.mubr.msk.bf16.mxu1 %vm1225_vm0, %v1224_v0  ;;  %v1119_v6 = vld [vmem:[%s1414_s1 + $0x18] sm:$0xff]   ;;  %v1120_v7 = vld [vmem:[%s1414_s1 + $0x20] sm:$0xff]   ;;  %v1124_v8 = vld [vmem:[#allocation2 + $0x10] sm:$0xff]  }
  0x2a   :  { %973 = vmatpush3.bf16.msra.mxu0 %v1116_v1  ;;  %989 = vmatpush3.bf16.msra.mxu1 %v1122_v4  ;;  %v1125_v9 = vld [vmem:[#allocation2 + $0x18] sm:$0xff]   ;;  %v1121_v10 = vld [vmem:[%s1414_s1 + $0x28] sm:$0xff]   ;;  %v55_v11 = vld [vmem:[%s1413_s0] sm:$0xff] }
  0x2b   :  { %974 = vmatprep.subr.bf16.mxu0 %v1224_v0  ;;  %990 = vmatprep.subr.bf16.mxu1 %v1224_v0  ;;  %v1126_v12 = vld [vmem:[#allocation2 + $0x20] sm:$0xff]   ;;  %v56_v13 = vpack.c.bf16 %v55_v11, %v55_v11  ;;  %v1127_v14 = vld [vmem:[#allocation2 + $0x28] sm:$0xff]   ;;  %v1128_v15 = vld [vmem:[#allocation2 + $0x30] sm:$0xff]  }
  0x2c   :  { %v1129_v16 = vld [vmem:[#allocation2 + $0x38] sm:$0xff]   ;;  %v1130_v17 = vld [vmem:[#allocation2 + $0x40] sm:$0xff]   ;;  %v1131_v18 = vld [vmem:[#allocation2 + $0x48] sm:$0xff]  }
  0x2d   :  { %v1132_v19 = vld [vmem:[#allocation2 + $0x50] sm:$0xff]   ;;  %v1133_v20 = vld [vmem:[#allocation2 + $0x58] sm:$0xff]   ;;  %v1134_v21 = vld [vmem:[#allocation2 + $0x60] sm:$0xff]  }
  0x2e   :  { %975 = vmatpush3.bf16.msra.mxu0 %v1117_v2  ;;  %991 = vmatpush3.bf16.msra.mxu1 %v1123_v5  ;;  %v1135_v22 = vld [vmem:[#allocation2 + $0x68] sm:$0xff]   ;;  %v849_v23 = vld [vmem:[%s1415_s2] ss:$0 sm:$0xff]  ;;  %v1136_v30 = vld [vmem:[#allocation2 + $0x70] sm:$0xff]  }
  0x2f   :  { %976 = vmatprep.subr.bf16.mxu0 %v1224_v0  ;;  %992 = vmatprep.subr.bf16.mxu1 %v1224_v0  ;;  %v1137_v31 = vld [vmem:[#allocation2 + $0x78] sm:$0xff]   ;;  %v1138_v32 = vld [vmem:[#allocation2 + $0x80] sm:$0xff]   ;;  %v1139_v33 = vld [vmem:[#allocation2 + $0x88] sm:$0xff]  }
  0x30   :  { %v1140_v34 = vld [vmem:[#allocation2 + $0x90] sm:$0xff]   ;;  %v1141_v35 = vld [vmem:[#allocation2 + $0x98] sm:$0xff]   ;;  %v1142_v36 = vld [vmem:[#allocation2 + $0xa0] sm:$0xff]  }
  0x31   :  { %v1143_v37 = vld [vmem:[#allocation2 + $0xa8] sm:$0xff]   ;;  %v857_v38 = vld [vmem:[#allocation4] ss:$0 sm:$0xff]  ;;  %v1144_v46 = vld [vmem:[#allocation2 + $0xb0] sm:$0xff]  }
  0x32   :  { %977 = vmatpush3.bf16.msra.mxu0 %v1118_v3  ;;  %993 = vmatpush3.bf16.msra.mxu1 %v1124_v8  ;;  %v1145_v47 = vld [vmem:[#allocation2 + $0xb8] sm:$0xff]   ;;  %v1146_v48 = vld [vmem:[#allocation2 + $0xc0] sm:$0xff]   ;;  %v1147_v49 = vld [vmem:[#allocation2 + $0xc8] sm:$0xff]  }
  0x33   :  { %978 = vmatprep.subr.bf16.mxu0 %v1224_v0  ;;  %994 = vmatprep.subr.bf16.mxu1 %v1224_v0  ;;  %v1148_v50 = vld [vmem:[#allocation2 + $0xd0] sm:$0xff]   ;;  %v1149_v51 = vld [vmem:[#allocation2 + $0xd8] sm:$0xff]   ;;  %v1150_v52 = vld [vmem:[#allocation2 + $0xe0] sm:$0xff]  }
  0x34   :  { %v1151_v53 = vld [vmem:[#allocation2 + $0xe8] sm:$0xff]   ;;  %v866_v54 = vld [vmem:[#allocation4 + $0x1] ss:$0 sm:$0xff]  ;;  %v1152_v62 = vld [vmem:[#allocation2 + $0xf0] sm:$0xff]  }
  0x35   :  { %v1153_v63 = vld [vmem:[#allocation2 + $0xf8] sm:$0xff]   ;;  %v1154_v1 = vld [vmem:[#allocation2 + $0x100] sm:$0xff]   ;;  %v1155_v2 = vld [vmem:[#allocation2 + $0x108] sm:$0xff]  }
  0x36   :  { %979 = vmatpush3.bf16.msra.mxu0 %v1119_v6  ;;  %995 = vmatpush3.bf16.msra.mxu1 %v1125_v9  ;;  %v1156_v3 = vld [vmem:[#allocation2 + $0x110] sm:$0xff]   ;;  %v1157_v4 = vld [vmem:[#allocation2 + $0x118] sm:$0xff]   ;;  %v1158_v5 = vld [vmem:[#allocation2 + $0x120] sm:$0xff]  }
  0x37   :  { %980 = vmatprep.subr.bf16.mxu0 %v1224_v0  ;;  %996 = vmatprep.subr.bf16.mxu1 %v1224_v0  ;;  %v1159_v6 = vld [vmem:[#allocation2 + $0x128] sm:$0xff]  }
  0x3a   :  { %981 = vmatpush3.bf16.msra.mxu0 %v1120_v7  ;;  %997 = vmatpush3.bf16.msra.mxu1 %v1126_v12  ;;  %v875_v7 = vld [vmem:[#allocation4 + $0x2] ss:$0 sm:$0xff] }
  0x3b   :  { %982 = vmatprep.subr.bf16.mxu0 %v1224_v0  ;;  %998 = vmatprep.subr.bf16.mxu1 %v1224_v0 }
  0x3e   :  { %983 = vmatpush3.bf16.msra.mxu0 %v1121_v10  ;;  %999 = vmatpush3.bf16.msra.mxu1 %v1127_v14 }
  0x3f   :  { %1008 = vmatprep.subr.bf16.mxu0 %v1224_v0  ;;  %1000 = vmatprep.subr.bf16.mxu1 %v1224_v0 }
  0x41   :  { %985 = vmatmul.mubr.msk.bf16.vlgmr.msra.gmra.mrb[0].mxu0 %vm112_vm1, %v56_v13 }
  0x42   :  { %1024 = vmatprep.mubr.msk.bf16.mxu0 %vm1225_vm0, %v1224_v0  ;;  %1001 = vmatpush3.bf16.msra.mxu1 %v1128_v15  ;;  %v1160_v15 = vld [vmem:[#allocation2 + $0x130] sm:$0xff]  }
  0x43   :  { %1002 = vmatprep.subr.bf16.mxu1 %v1224_v0  ;;  %1009 = vmatpush3.bf16.msra.mxu0 %v1130_v17  ;;  %v1162_v17 = vld [vmem:[%s1418_s5] sm:$0xff]  }
  0x44   :  { %1010 = vmatprep.subr.bf16.mxu0 %v1224_v0 }
  0x46   :  { %1003 = vmatpush3.bf16.msra.mxu1 %v1129_v16  ;;  %v1161_v16 = vld [vmem:[#allocation2 + $0x138] sm:$0xff]  }
  0x47   :  { %1028 = vmatprep.subr.bf16.mxu1 %v1224_v0  ;;  %1011 = vmatpush3.bf16.msra.mxu0 %v1131_v18  ;;  %v1163_v18 = vld [vmem:[%s1418_s5 + $0x8] sm:$0xff]  }
  0x48   :  { %1012 = vmatprep.subr.bf16.mxu0 %v1224_v0 }
  0x4b   :  { %1013 = vmatpush3.bf16.msra.mxu0 %v1132_v19  ;;  %v1164_v19 = vld [vmem:[%s1418_s5 + $0x10] sm:$0xff]  }
  0x4c   :  { %1014 = vmatprep.subr.bf16.mxu0 %v1224_v0 }
  0x4f   :  { %1015 = vmatpush3.bf16.msra.mxu0 %v1133_v20  ;;  %v1165_v20 = vld [vmem:[%s1418_s5 + $0x18] sm:$0xff]  }
  0x50   :  { %1016 = vmatprep.subr.bf16.mxu0 %v1224_v0 }
  0x53   :  { %1017 = vmatpush3.bf16.msra.mxu0 %v1134_v21  ;;  %v1166_v21 = vld [vmem:[%s1418_s5 + $0x20] sm:$0xff]  }
  0x54   :  { %1018 = vmatprep.subr.bf16.mxu0 %v1224_v0 }
  0x57   :  { %1019 = vmatpush3.bf16.msra.mxu0 %v1135_v22  ;;  %v1167_v22 = vld [vmem:[%s1418_s5 + $0x28] sm:$0xff]  }
  0x58   :  { %1020 = vmatprep.subr.bf16.mxu0 %v1224_v0 }
  0x5b   :  { %1021 = vmatpush3.bf16.msra.mxu0 %v1136_v30 }
  0x5c   :  { %1022 = vmatprep.subr.bf16.mxu0 %v1224_v0 }
  0x5f   :  { %1023 = vmatpush3.bf16.msra.mxu0 %v1137_v31  ;;  %v1168_v31 = vld [vmem:[%s1418_s5 + $0x30] sm:$0xff]  }
  0x60   :  { %1048 = vmatprep.subr.bf16.mxu0 %v1224_v0 }
 0x114   :  { %v150_v24 = vpop.f32.mrb[0].mxu0 }
 0x115   :  { %v151_v25 = vadd.f32 %v849_v23, %v150_v24  ;;  %v986_v26 = vpop.f32.mrb[1].mxu0  ;;  %v884_v23 = vld [vmem:[#allocation4 + $0x3] ss:$0 sm:$0xff] }
 0x116   :  { %v153_v27 = vpop.f32.mrb[2].mxu0 }
 0x117   :  { %v156_v28 = vpack.c.bf16 %v151_v25, %v151_v25  ;;  %v987_v29 = vpop.f32.mrb[3].mxu0 }
 0x119   :  { %1005 = vmatmul.mubr.bf16.vlgmr.msra.gmra.mrb[0].mxu1 %v156_v28 }
 0x11a   :  { %1044 = vmatprep.mubr.msk.bf16.mxu1 %vm1225_vm0, %v1224_v0  ;;  %1029 = vmatpush3.bf16.msra.mxu1 %v1138_v32  ;;  %v1169_v32 = vld [vmem:[%s1418_s5 + $0x38] sm:$0xff]  }
 0x11b   :  { %1030 = vmatprep.subr.bf16.mxu1 %v1224_v0 }
 0x11e   :  { %1031 = vmatpush3.bf16.msra.mxu1 %v1139_v33  ;;  %v893_v33 = vld [vmem:[#allocation4 + $0x4] ss:$0 sm:$0xff] }
 0x11f   :  { %1032 = vmatprep.subr.bf16.mxu1 %v1224_v0 }
 0x122   :  { %1033 = vmatpush3.bf16.msra.mxu1 %v1140_v34 }
 0x123   :  { %1034 = vmatprep.subr.bf16.mxu1 %v1224_v0 }
 0x126   :  { %1035 = vmatpush3.bf16.msra.mxu1 %v1141_v35 }
 0x127   :  { %1036 = vmatprep.subr.bf16.mxu1 %v1224_v0 }
 0x12a   :  { %1037 = vmatpush3.bf16.msra.mxu1 %v1142_v36 }
 0x12b   :  { %1038 = vmatprep.subr.bf16.mxu1 %v1224_v0 }
 0x12e   :  { %1039 = vmatpush3.bf16.msra.mxu1 %v1143_v37 }
 0x12f   :  { %1040 = vmatprep.subr.bf16.mxu1 %v1224_v0 }
 0x132   :  { %1041 = vmatpush3.bf16.msra.mxu1 %v1144_v46 }
 0x133   :  { %1042 = vmatprep.subr.bf16.mxu1 %v1224_v0 }
 0x136   :  { %1043 = vmatpush3.bf16.msra.mxu1 %v1145_v47 }
 0x137   :  { %1068 = vmatprep.subr.bf16.mxu1 %v1224_v0 }
 0x1ec   :  { %v262_v39 = vpop.f32.mrb[0].mxu1 }
 0x1ed   :  { %v263_v40 = vadd.f32 %v857_v38, %v262_v39  ;;  %v1006_v41 = vpop.f32.mrb[1].mxu1 }
 0x1ee   :  { %v265_v42 = vpop.f32.mrb[2].mxu1  ;;  %v902_v41 = vld [vmem:[%s1419_s6] ss:$0 sm:$0xff] }
 0x1ef   :  { %v268_v43 = vmax.f32 %v263_v40, 0.0  ;;  %v1007_v44 = vpop.f32.mrb[3].mxu1 }
 0x1f1   :  { %v269_v45 = vpack.c.bf16 %v268_v43, %v268_v43 }
 0x1f3   :  { %1025 = vmatmul.mubr.bf16.vlgmr.msra.gmra.mrb[4].mxu0 %v269_v45 }
 0x1f4   :  { %1064 = vmatprep.mubr.msk.bf16.mxu0 %vm1225_vm0, %v1224_v0  ;;  %1049 = vmatpush3.bf16.msra.mxu0 %v1146_v48 }
 0x1f5   :  { %1050 = vmatprep.subr.bf16.mxu0 %v1224_v0 }
 0x1f8   :  { %1051 = vmatpush3.bf16.msra.mxu0 %v1147_v49 }
 0x1f9   :  { %1052 = vmatprep.subr.bf16.mxu0 %v1224_v0 }
 0x1fc   :  { %1053 = vmatpush3.bf16.msra.mxu0 %v1148_v50 }
 0x1fd   :  { %1054 = vmatprep.subr.bf16.mxu0 %v1224_v0 }
 0x200   :  { %1055 = vmatpush3.bf16.msra.mxu0 %v1149_v51 }
 0x201   :  { %1056 = vmatprep.subr.bf16.mxu0 %v1224_v0 }
 0x204   :  { %1057 = vmatpush3.bf16.msra.mxu0 %v1150_v52 }
 0x205   :  { %1058 = vmatprep.subr.bf16.mxu0 %v1224_v0 }
 0x208   :  { %1059 = vmatpush3.bf16.msra.mxu0 %v1151_v53 }
 0x209   :  { %1060 = vmatprep.subr.bf16.mxu0 %v1224_v0 }
 0x20c   :  { %1061 = vmatpush3.bf16.msra.mxu0 %v1152_v62 }
 0x20d   :  { %1062 = vmatprep.subr.bf16.mxu0 %v1224_v0 }
 0x210   :  { %1063 = vmatpush3.bf16.msra.mxu0 %v1153_v63 }
 0x211   :  { %1088 = vmatprep.subr.bf16.mxu0 %v1224_v0 }
 0x2c6   :  { %v377_v55 = vpop.f32.mrb[4].mxu0 }
 0x2c7   :  { %v378_v56 = vadd.f32 %v866_v54, %v377_v55  ;;  %v1026_v57 = vpop.f32.mrb[5].mxu0 }
 0x2c8   :  { %v380_v58 = vpop.f32.mrb[6].mxu0 }
 0x2c9   :  { %v383_v59 = vmax.f32 %v378_v56, 0.0  ;;  %v1027_v60 = vpop.f32.mrb[7].mxu0 }
 0x2cb   :  { %v384_v61 = vpack.c.bf16 %v383_v59, %v383_v59 }
 0x2cd   :  { %1045 = vmatmul.mubr.bf16.vlgmr.msra.gmra.mrb[4].mxu1 %v384_v61 }
 0x2ce   :  { %1084 = vmatprep.mubr.msk.bf16.mxu1 %vm1225_vm0, %v1224_v0  ;;  %1069 = vmatpush3.bf16.msra.mxu1 %v1154_v1 }
 0x2cf   :  { %1070 = vmatprep.subr.bf16.mxu1 %v1224_v0 }
 0x2d2   :  { %1071 = vmatpush3.bf16.msra.mxu1 %v1155_v2 }
 0x2d3   :  { %1072 = vmatprep.subr.bf16.mxu1 %v1224_v0 }
 0x2d6   :  { %1073 = vmatpush3.bf16.msra.mxu1 %v1156_v3 }
 0x2d7   :  { %1074 = vmatprep.subr.bf16.mxu1 %v1224_v0 }
 0x2da   :  { %1075 = vmatpush3.bf16.msra.mxu1 %v1157_v4 }
 0x2db   :  { %1076 = vmatprep.subr.bf16.mxu1 %v1224_v0 }
 0x2de   :  { %1077 = vmatpush3.bf16.msra.mxu1 %v1158_v5 }
 0x2df   :  { %1078 = vmatprep.subr.bf16.mxu1 %v1224_v0 }
 0x2e2   :  { %1079 = vmatpush3.bf16.msra.mxu1 %v1159_v6 }
 0x2e3   :  { %1080 = vmatprep.subr.bf16.mxu1 %v1224_v0 }
 0x2e6   :  { %1081 = vmatpush3.bf16.msra.mxu1 %v1160_v15 }
 0x2e7   :  { %1082 = vmatprep.subr.bf16.mxu1 %v1224_v0 }
 0x2ea   :  { %1083 = vmatpush3.bf16.msra.mxu1 %v1161_v16 }
 0x3a0   :  { %v492_v8 = vpop.f32.mrb[4].mxu1 }
 0x3a1   :  { %v493_v9 = vadd.f32 %v875_v7, %v492_v8  ;;  %v1046_v10 = vpop.f32.mrb[5].mxu1 }
 0x3a2   :  { %v495_v11 = vpop.f32.mrb[6].mxu1 }
 0x3a3   :  { %v498_v12 = vmax.f32 %v493_v9, 0.0  ;;  %v1047_v13 = vpop.f32.mrb[7].mxu1 }
 0x3a5   :  { %v499_v14 = vpack.c.bf16 %v498_v12, %v498_v12 }
 0x3a7   :  { %1065 = vmatmul.mubr.bf16.vlgmr.msra.gmra.mrb[8].mxu0 %v499_v14 }
 0x3a8   :  { %1104 = vmatprep.mubr.msk.bf16.mxu0 %vm1225_vm0, %v1224_v0  ;;  %1089 = vmatpush3.bf16.msra.mxu0 %v1162_v17 }
 0x3a9   :  { %1090 = vmatprep.subr.bf16.mxu0 %v1224_v0 }
 0x3ac   :  { %1091 = vmatpush3.bf16.msra.mxu0 %v1163_v18 }
 0x3ad   :  { %1092 = vmatprep.subr.bf16.mxu0 %v1224_v0 }
 0x3b0   :  { %1093 = vmatpush3.bf16.msra.mxu0 %v1164_v19 }
 0x3b1   :  { %1094 = vmatprep.subr.bf16.mxu0 %v1224_v0 }
 0x3b4   :  { %1095 = vmatpush3.bf16.msra.mxu0 %v1165_v20 }
 0x3b5   :  { %1096 = vmatprep.subr.bf16.mxu0 %v1224_v0 }
 0x3b8   :  { %1097 = vmatpush3.bf16.msra.mxu0 %v1166_v21 }
 0x3b9   :  { %1098 = vmatprep.subr.bf16.mxu0 %v1224_v0 }
 0x3bc   :  { %1099 = vmatpush3.bf16.msra.mxu0 %v1167_v22 }
 0x3bd   :  { %1100 = vmatprep.subr.bf16.mxu0 %v1224_v0 }
 0x3c0   :  { %1101 = vmatpush3.bf16.msra.mxu0 %v1168_v31 }
 0x3c1   :  { %1102 = vmatprep.subr.bf16.mxu0 %v1224_v0 }
 0x3c4   :  { %1103 = vmatpush3.bf16.msra.mxu0 %v1169_v32 }
 0x47a   :  { %v607_v24 = vpop.f32.mrb[8].mxu0 }
 0x47b   :  { %v608_v25 = vadd.f32 %v884_v23, %v607_v24  ;;  %v1066_v26 = vpop.f32.mrb[9].mxu0 }
 0x47c   :  { %v610_v27 = vpop.f32.mrb[10].mxu0 }
 0x47d   :  { %v613_v28 = vmax.f32 %v608_v25, 0.0  ;;  %v1067_v29 = vpop.f32.mrb[11].mxu0 }
 0x47f   :  { %v614_v30 = vpack.c.bf16 %v613_v28, %v613_v28 }
 0x481   :  { %1085 = vmatmul.mubr.bf16.vlgmr.msra.gmra.mrb[8].mxu1 %v614_v30 }
 0x554   :  { %v722_v34 = vpop.f32.mrb[8].mxu1 }
 0x555   :  { %v723_v35 = vadd.f32 %v893_v33, %v722_v34  ;;  %v1086_v36 = vpop.f32.mrb[9].mxu1 }
 0x556   :  { %v725_v37 = vpop.f32.mrb[10].mxu1 }
 0x557   :  { %v728_v38 = vmax.f32 %v723_v35, 0.0  ;;  %v1087_v39 = vpop.f32.mrb[11].mxu1 }
 0x559   :  { %v729_v40 = vpack.c.bf16 %v728_v38, %v728_v38 }
 0x55b   :  { %1105 = vmatmul.mubr.bf16.vlgmr.msra.gmra.mrb[12].mxu0 %v729_v40 }
 0x62e   :  { %v835_v42 = vpop.f32.mrb[12].mxu0 }
 0x62f   :  { %v836_v0 = vadd.f32 %v902_v41, %v835_v42  ;;  %v1106_v43 = vpop.f32.mrb[13].mxu0 }
 0x630   :  { %v838_v44 = vpop.f32.mrb[14].mxu0 }
 0x631   :  { %v841_v45 = vpack.c.bf16 %v836_v0, %v836_v0  ;;  %v1107_v46 = vpop.f32.mrb[15].mxu0 }
 0x633   :  { %842 = vst [vmem:[%s1420_s7] sm:$0xf] %v841_v45 }
 0x634   :  { %847 = vsyncpa [#allocation3], 1 }
 0x635   :  { %848 = vsyncpa [#allocation5], 1 }

</bundles_post_ra>
